<compile_context>
chip_gen: v7x
topology: tpu7x:2x2x1
jax: 0.10.0
libtpu: 0.0.40
codegen_flags: <defaults>
</compile_context>

<pallas_src>
import jax
import jax.numpy as jnp
from jax.experimental import pallas as pl
from jax.experimental.pallas import tpu as pltpu


def _round_up(x, m):
    return (x + m - 1) // m * m


def _sublane_multiple(dtype):
    itemsize = jnp.dtype(dtype).itemsize
    if itemsize >= 4:
        return 8
    if itemsize == 2:
        return 16
    return 32


def _vmem_capacity_bytes():
    # Generation-aware budget; fallback is conservative (valid on v7x, which
    # has the smallest per-TC VMEM at 64 MiB).
    try:
        return int(pltpu.get_tpu_info().vmem_capacity_bytes)
    except Exception:
        return 64 * (1 << 20)


def _erf_approx(z):
    # Abramowitz & Stegun 7.1.26, |error| <= 1.5e-7.  Uses only exp (EUP) and
    # VPU arithmetic/select, so it lowers on every TPU generation.
    a1, a2, a3, a4, a5 = (0.254829592, -0.284496736, 1.421413741,
                          -1.453152027, 1.061405429)
    p = 0.3275911
    az = jnp.abs(z)
    t = 1.0 / (1.0 + p * az)
    poly = ((((a5 * t + a4) * t + a3) * t + a2) * t + a1) * t
    r = 1.0 - poly * jnp.exp(-az * az)
    return jnp.where(z >= 0, r, -r)


def _gelu_exact(h):
    # torch.nn.GELU() default = exact erf form: 0.5*h*(1 + erf(h/sqrt(2))).
    return 0.5 * h * (1.0 + _erf_approx(h * 0.7071067811865476))


def _residual_ff_kernel(x_ref, w1_ref, b1_ref, w2_ref, b2_ref, o_ref):
    """One (tm, D) row tile: out = gelu(x@W1 + b1) @ W2 + b2 + x."""
    x = x_ref[...]
    h = jnp.dot(x.astype(w1_ref.dtype), w1_ref[...],
                preferred_element_type=jnp.float32)
    h = _gelu_exact(h + b1_ref[...].astype(jnp.float32))
    y = jnp.dot(h.astype(w2_ref.dtype), w2_ref[...],
                preferred_element_type=jnp.float32)
    y = y + b2_ref[...].astype(jnp.float32)
    o_ref[...] = (y + x.astype(jnp.float32)).astype(o_ref.dtype)


def _residual_ff_kernel_htiled(x_ref, w1_ref, b1_ref, w2_ref, b2_ref, o_ref,
                               acc_ref):
    """H-tiled variant: grid=(M tiles, H tiles), H last + 'arbitrary' (P3)."""
    h_idx = pl.program_id(1)

    @pl.when(h_idx == 0)
    def _():
        acc_ref[...] = jnp.zeros_like(acc_ref)

    x = x_ref[...]
    h = jnp.dot(x.astype(w1_ref.dtype), w1_ref[...],
                preferred_element_type=jnp.float32)
    h = _gelu_exact(h + b1_ref[...].astype(jnp.float32))
    acc_ref[...] += jnp.dot(h.astype(w2_ref.dtype), w2_ref[...],
                            preferred_element_type=jnp.float32)

    @pl.when(h_idx == pl.num_programs(1) - 1)
    def _():
        y = acc_ref[...] + b2_ref[...].astype(jnp.float32)
        o_ref[...] = (y + x.astype(jnp.float32)).astype(o_ref.dtype)


def residual_feedforward(x, w1, b1, w2, b2, *, tm=None, use_bf16_gemm=False,
                         vmem_budget_bytes=None):
    """Residual(FeedForward)(x) = gelu(x @ W1 + b1) @ W2 + b2 + x, fused.

    x : (B, N, D);  w1: (D, H), b1: (H,), w2: (H, D), b2: (D,)
    """
    B, N, D = x.shape
    H = w1.shape[1]
    M = B * N

    gemm_w_dtype = (jnp.bfloat16
                    if (use_bf16_gemm and jnp.dtype(w1.dtype) == jnp.float32)
                    else w1.dtype)
    x_item = jnp.dtype(x.dtype).itemsize
    w_item = jnp.dtype(gemm_w_dtype).itemsize
    sub = _sublane_multiple(x.dtype)

    # Lane-pad channel/hidden dims only when genuinely needed.
    D_pad = D if D % 128 == 0 else _round_up(D, 128)
    H_pad = H if H % 128 == 0 else _round_up(H, 128)
    need_d_pad = D_pad != D

    vmem_cap = _vmem_capacity_bytes()
    ws_cap = (int(0.72 * vmem_cap) if vmem_budget_bytes is None
              else int(vmem_budget_bytes))
    if tm is None:
        tm = 512 if vmem_cap >= 96 * (1 << 20) else 256

    tm_eff = _round_up(min(tm, _round_up(M, sub)), sub)

    def ws_standard(tm_):
        io = 2 * 2 * tm_ * D_pad * x_item          # x + out, double-buffered
        weights = 2 * D_pad * H_pad * w_item       # W1 + W2, single-buffered
        biases = (H_pad + D_pad) * 4
        hidden = 2 * tm_ * H_pad * 4               # f32 intermediates
        return io + weights + biases + hidden

    def ws_htiled(tm_, th_):
        io = 2 * 2 * tm_ * D_pad * x_item
        weights = 2 * 2 * D_pad * th_ * w_item     # streamed along H -> 2 bufs
        biases = (th_ + D_pad) * 4
        hidden = 2 * tm_ * th_ * 4
        acc = tm_ * D_pad * 4
        return io + weights + biases + hidden + acc

    # Prefer resident weights; shrink tm but never below MXU-filling 128 rows
    # (or the whole problem, if smaller).
    tm_floor = min(tm_eff, max(sub, 128))
    while tm_eff > tm_floor and ws_standard(tm_eff) > ws_cap:
        tm_eff = max(tm_floor, _round_up(tm_eff // 2, sub))

    use_htiled = ws_standard(tm_eff) > ws_cap
    tH = H_pad
    if use_htiled:
        while tH > 128 and ws_htiled(tm_eff, tH) > ws_cap:
            tH = max(128, _round_up(tH // 2, 128))
        while tm_eff > tm_floor and ws_htiled(tm_eff, tH) > ws_cap:
            tm_eff = max(tm_floor, _round_up(tm_eff // 2, sub))
        # TODO(synk): if even (tm=128, tH=128) overflows the budget a D-tiled
        # second GEMM would be needed; we let the compiler fail loudly instead.

    h_tiles = pl.cdiv(H_pad, tH) if use_htiled else 1
    H_full = h_tiles * tH if use_htiled else H_pad
    m_tiles = pl.cdiv(M, tm_eff)

    # ---- glue (plain JAX; activation pad/slice only when D needs lanes) ----
    x2 = x.reshape(M, D)
    if need_d_pad:
        x2 = jnp.pad(x2, ((0, 0), (0, D_pad - D)))

    w1p = w1.astype(gemm_w_dtype)
    w2p = w2.astype(gemm_w_dtype)
    b1p, b2p = b1, b2
    if H_full != H:
        w1p = jnp.pad(w1p, ((0, 0), (0, H_full - H)))
        b1p = jnp.pad(b1p, (0, H_full - H))
        w2p = jnp.pad(w2p, ((0, H_full - H), (0, 0)))
    if need_d_pad:
        w1p = jnp.pad(w1p, ((0, D_pad - D), (0, 0)))
        w2p = jnp.pad(w2p, ((0, 0), (0, D_pad - D)))
        b2p = jnp.pad(b2p, (0, D_pad - D))
    b1p = b1p.reshape(1, H_full)
    b2p = b2p.reshape(1, D_pad)

    # Grid-invariant operands: single-buffer (no 2x VMEM for resident weights).
    invariant = dict(pipeline_mode=pl.Buffered(1))

    if not use_htiled:
        grid = (m_tiles,)
        in_specs = [
            pl.BlockSpec((tm_eff, D_pad), lambda i: (i, 0)),               # x
            pl.BlockSpec((D_pad, H_full), lambda i: (0, 0), **invariant),  # W1
            pl.BlockSpec((1, H_full), lambda i: (0, 0), **invariant),      # b1
            pl.BlockSpec((H_full, D_pad), lambda i: (0, 0), **invariant),  # W2
            pl.BlockSpec((1, D_pad), lambda i: (0, 0), **invariant),       # b2
        ]
        out_specs = pl.BlockSpec((tm_eff, D_pad), lambda i: (i, 0))
        scratch_shapes = []
        kernel = _residual_ff_kernel
        dim_sem = ("parallel",)
        ws = ws_standard(tm_eff)
    else:
        grid = (m_tiles, h_tiles)
        in_specs = [
            pl.BlockSpec((tm_eff, D_pad), lambda i, h: (i, 0)),            # x
            pl.BlockSpec((D_pad, tH), lambda i, h: (0, h)),                # W1
            pl.BlockSpec((1, tH), lambda i, h: (0, h)),                    # b1
            pl.BlockSpec((tH, D_pad), lambda i, h: (h, 0)),                # W2
            pl.BlockSpec((1, D_pad), lambda i, h: (0, 0), **invariant),    # b2
        ]
        out_specs = pl.BlockSpec((tm_eff, D_pad), lambda i, h: (i, 0))
        scratch_shapes = [pltpu.VMEM((tm_eff, D_pad), jnp.float32)]
        kernel = _residual_ff_kernel_htiled
        dim_sem = ("parallel", "arbitrary")
        ws = ws_htiled(tm_eff, tH)

    # Scoped VMEM request: enough headroom over the working set, but capped at
    # 85% of physical so Mosaic keeps room for its own scratch (v7x: 64 MiB).
    vmem_limit = int(min(0.85 * vmem_cap, max(32 * (1 << 20), 1.5 * ws)))

    cost = pl.CostEstimate(
        flops=4 * M * D_pad * H_full,                     # two GEMMs
        transcendentals=M * H_full,                       # GELU
        bytes_accessed=(2 * M * D_pad * x_item            # x in + out
                        + 2 * D_pad * H_full * w_item     # W1 + W2
                        + (H_full + D_pad) * 4),
    )

    out = pl.pallas_call(
        kernel,
        out_shape=jax.ShapeDtypeStruct((M, D_pad), x.dtype),
        grid_spec=pltpu.PrefetchScalarGridSpec(
            num_scalar_prefetch=0,
            grid=grid,
            in_specs=in_specs,
            out_specs=out_specs,
            scratch_shapes=scratch_shapes,
        ),
        compiler_params=pltpu.CompilerParams(
            dimension_semantics=dim_sem,
            vmem_limit_bytes=vmem_limit,
        ),
        cost_estimate=cost,
    )(x2, w1p, b1p, w2p, b2p)

    if need_d_pad:
        out = out[:, :D]
    return out.reshape(B, N, D)


class Residual:
    """JAX/Pallas mirror of vit_pytorch.Residual for the FeedForward case."""

    def __init__(self, params):
        self.params = params  # (w1, b1, w2, b2)

    def __call__(self, x):
        w1, b1, w2, b2 = self.params
        return residual_feedforward(x, w1, b1, w2, b2)


if __name__ == "__main__":
    def ref_fn(x, w1, b1, w2, b2):
        # Exact-erf GELU, same as torch.nn.GELU().
        return jax.nn.gelu(x @ w1 + b1, approximate=False) @ w2 + b2 + x

    def make(key, B, N, D, HID):
        kx, k1, k2, k3, k4 = jax.random.split(key, 5)
        x = jax.random.normal(kx, (B, N, D), dtype=jnp.float32)
        w1 = jax.random.normal(k1, (D, HID), dtype=jnp.float32) * 0.02
        b1 = jax.random.normal(k2, (HID,), dtype=jnp.float32) * 0.02
        w2 = jax.random.normal(k3, (HID, D), dtype=jnp.float32) * 0.02
        b2 = jax.random.normal(k4, (D,), dtype=jnp.float32) * 0.02
        return x, w1, b1, w2, b2

    key = jax.random.PRNGKey(0)
    ka, kb, kc = jax.random.split(key, 3)

    # 1) Small module-shaped case (D/H not multiples of 128 -> lane-pad path).
    x, w1, b1, w2, b2 = make(ka, 2, 8, 32, 64)
    out = jax.block_until_ready(Residual((w1, b1, w2, b2))(x))
    ref = ref_fn(x, w1, b1, w2, b2)
    assert out.shape == x.shape and out.dtype == x.dtype
    assert jnp.allclose(out, ref, atol=2e-3, rtol=2e-3), "mismatch (case 1)"

    # 2) Lane-aligned path (no wrapper pad/slice) + partial boundary row block.
    x, w1, b1, w2, b2 = make(kb, 2, 20, 128, 256)
    out = jax.block_until_ready(residual_feedforward(x, w1, b1, w2, b2, tm=16))
    ref = ref_fn(x, w1, b1, w2, b2)
    assert jnp.allclose(out, ref, atol=2e-3, rtol=2e-3), "mismatch (case 2)"

    # 3) H-tiled reduction path (forced via a tiny VMEM working-set budget).
    x, w1, b1, w2, b2 = make(kc, 2, 16, 128, 512)
    out = jax.block_until_ready(
        residual_feedforward(x, w1, b1, w2, b2, vmem_budget_bytes=420_000))
    ref = ref_fn(x, w1, b1, w2, b2)
    assert jnp.allclose(out, ref, atol=2e-3, rtol=2e-3), "mismatch (case 3)"

    print("KERNEL_OK")
</pallas_src>

<mosaic_0001>
module attributes {stable_mosaic.version = 11 : i64} {
  func.func @_residual_ff_kernel(%arg0: i32, %arg1: memref<16x128xf32, #tpu.memory_space<vmem>>, %arg2: memref<128x128xf32, #tpu.memory_space<vmem>>, %arg3: memref<1x128xf32, #tpu.memory_space<vmem>>, %arg4: memref<128x128xf32, #tpu.memory_space<vmem>>, %arg5: memref<1x128xf32, #tpu.memory_space<vmem>>, %arg6: memref<16x128xf32, #tpu.memory_space<vmem>>) attributes {dimension_semantics = [#tpu.dimension_semantics<parallel>], iteration_bounds = array<i64: 1>, scalar_prefetch = 0 : i64, scratch_operands = 0 : i64, tpu.core_type = #tpu.core_type<tc>, window_params = [{transform_indices = @transform_0, window_bounds = array<i64: 16, 128>}, {pipeline_mode = #tpu.pipeline_mode<synchronous>, transform_indices = @transform_1, window_bounds = array<i64: 128, 128>}, {pipeline_mode = #tpu.pipeline_mode<synchronous>, transform_indices = @transform_2, window_bounds = array<i64: 1, 128>}, {pipeline_mode = #tpu.pipeline_mode<synchronous>, transform_indices = @transform_3, window_bounds = array<i64: 128, 128>}, {pipeline_mode = #tpu.pipeline_mode<synchronous>, transform_indices = @transform_4, window_bounds = array<i64: 1, 128>}, {transform_indices = @transform_5, window_bounds = array<i64: 16, 128>}]} {
    %c0 = arith.constant 0 : index
    %c0_0 = arith.constant 0 : index
    %0 = vector.load %arg1[%c0, %c0_0] : memref<16x128xf32, #tpu.memory_space<vmem>>, vector<16x128xf32>
    %c0_1 = arith.constant 0 : index
    %c0_2 = arith.constant 0 : index
    %1 = vector.load %arg2[%c0_1, %c0_2] : memref<128x128xf32, #tpu.memory_space<vmem>>, vector<128x128xf32>
    %cst = arith.constant dense<0.000000e+00> : vector<16x128xf32>
    %2 = tpu.matmul %0, %1, %cst {dimension_numbers = #tpu.dot_dimension_numbers<[1], [0], [0], [1], [0, 0, 1, 1], [], []>} : vector<16x128xf32>, vector<128x128xf32>, vector<16x128xf32> -> vector<16x128xf32>
    %c0_3 = arith.constant 0 : index
    %c0_4 = arith.constant 0 : index
    %3 = vector.load %arg3[%c0_3, %c0_4] : memref<1x128xf32, #tpu.memory_space<vmem>>, vector<1x128xf32>
    %4 = vector.broadcast %3 : vector<1x128xf32> to vector<16x128xf32>
    %5 = arith.addf %2, %4 : vector<16x128xf32>
    %cst_5 = arith.constant 5.000000e-01 : f32
    %6 = vector.broadcast %cst_5 : f32 to vector<16x128xf32>
    %7 = arith.mulf %6, %5 : vector<16x128xf32>
    %cst_6 = arith.constant 0.707106769 : f32
    %8 = vector.broadcast %cst_6 : f32 to vector<16x128xf32>
    %9 = arith.mulf %5, %8 : vector<16x128xf32>
    %10 = math.absf %9 : vector<16x128xf32>
    %cst_7 = arith.constant 0.327591091 : f32
    %11 = vector.broadcast %cst_7 : f32 to vector<16x128xf32>
    %12 = arith.mulf %11, %10 : vector<16x128xf32>
    %cst_8 = arith.constant 1.000000e+00 : f32
    %13 = vector.broadcast %cst_8 : f32 to vector<16x128xf32>
    %14 = arith.addf %13, %12 : vector<16x128xf32>
    %cst_9 = arith.constant 1.000000e+00 : f32
    %15 = vector.broadcast %cst_9 : f32 to vector<16x128xf32>
    %16 = arith.divf %15, %14 : vector<16x128xf32>
    %cst_10 = arith.constant 1.06140542 : f32
    %17 = vector.broadcast %cst_10 : f32 to vector<16x128xf32>
    %18 = arith.mulf %17, %16 : vector<16x128xf32>
    %cst_11 = arith.constant -1.45315206 : f32
    %19 = vector.broadcast %cst_11 : f32 to vector<16x128xf32>
    %20 = arith.addf %18, %19 : vector<16x128xf32>
    %21 = arith.mulf %20, %16 : vector<16x128xf32>
    %cst_12 = arith.constant 1.42141378 : f32
    %22 = vector.broadcast %cst_12 : f32 to vector<16x128xf32>
    %23 = arith.addf %21, %22 : vector<16x128xf32>
    %24 = arith.mulf %23, %16 : vector<16x128xf32>
    %cst_13 = arith.constant -0.284496725 : f32
    %25 = vector.broadcast %cst_13 : f32 to vector<16x128xf32>
    %26 = arith.addf %24, %25 : vector<16x128xf32>
    %27 = arith.mulf %26, %16 : vector<16x128xf32>
    %cst_14 = arith.constant 0.254829586 : f32
    %28 = vector.broadcast %cst_14 : f32 to vector<16x128xf32>
    %29 = arith.addf %27, %28 : vector<16x128xf32>
    %30 = arith.mulf %29, %16 : vector<16x128xf32>
    %cst_15 = arith.constant 0.000000e+00 : f32
    %31 = vector.broadcast %cst_15 : f32 to vector<16x128xf32>
    %32 = arith.subf %31, %10 : vector<16x128xf32>
    %33 = arith.mulf %32, %10 : vector<16x128xf32>
    %34 = math.exp %33 : vector<16x128xf32>
    %35 = arith.mulf %30, %34 : vector<16x128xf32>
    %cst_16 = arith.constant 1.000000e+00 : f32
    %36 = vector.broadcast %cst_16 : f32 to vector<16x128xf32>
    %37 = arith.subf %36, %35 : vector<16x128xf32>
    %cst_17 = arith.constant 0.000000e+00 : f32
    %38 = vector.broadcast %cst_17 : f32 to vector<16x128xf32>
    %39 = arith.cmpf oge, %9, %38 : vector<16x128xf32>
    %cst_18 = arith.constant 0.000000e+00 : f32
    %40 = vector.broadcast %cst_18 : f32 to vector<16x128xf32>
    %41 = arith.subf %40, %37 : vector<16x128xf32>
    %42 = arith.select %39, %37, %41 : vector<16x128xi1>, vector<16x128xf32>
    %cst_19 = arith.constant 1.000000e+00 : f32
    %43 = vector.broadcast %cst_19 : f32 to vector<16x128xf32>
    %44 = arith.addf %43, %42 : vector<16x128xf32>
    %45 = arith.mulf %7, %44 : vector<16x128xf32>
    %c0_20 = arith.constant 0 : index
    %c0_21 = arith.constant 0 : index
    %46 = vector.load %arg4[%c0_20, %c0_21] : memref<128x128xf32, #tpu.memory_space<vmem>>, vector<128x128xf32>
    %cst_22 = arith.constant dense<0.000000e+00> : vector<16x128xf32>
    %47 = tpu.matmul %45, %46, %cst_22 {dimension_numbers = #tpu.dot_dimension_numbers<[1], [0], [0], [1], [0, 0, 1, 1], [], []>} : vector<16x128xf32>, vector<128x128xf32>, vector<16x128xf32> -> vector<16x128xf32>
    %c0_23 = arith.constant 0 : index
    %c0_24 = arith.constant 0 : index
    %48 = vector.load %arg5[%c0_23, %c0_24] : memref<1x128xf32, #tpu.memory_space<vmem>>, vector<1x128xf32>
    %49 = vector.broadcast %48 : vector<1x128xf32> to vector<16x128xf32>
    %50 = arith.addf %47, %49 : vector<16x128xf32>
    %51 = arith.addf %50, %0 : vector<16x128xf32>
    %c0_25 = arith.constant 0 : index
    %c0_26 = arith.constant 0 : index
    %52 = vector.load %arg6[%c0_25, %c0_26] : memref<16x128xf32, #tpu.memory_space<vmem>>, vector<16x128xf32>
    tpu.vector_store %arg6[%c0_25, %c0_26], %51 {strides = array<i32>} : memref<16x128xf32, #tpu.memory_space<vmem>>, vector<16x128xf32>,
    return
  }
  func.func @transform_0(%arg0: i32) -> (i32, i32) {
    %c0_i32 = arith.constant 0 : i32
    %c0_i32_0 = arith.constant 0 : i32
    return %arg0, %c0_i32 : i32, i32
  }
  func.func @transform_1(%arg0: i32) -> (i32, i32) {
    %c0_i32 = arith.constant 0 : i32
    %c0_i32_0 = arith.constant 0 : i32
    %c0_i32_1 = arith.constant 0 : i32
    return %c0_i32, %c0_i32_0 : i32, i32
  }
  func.func @transform_2(%arg0: i32) -> (i32, i32) {
    %c0_i32 = arith.constant 0 : i32
    %c0_i32_0 = arith.constant 0 : i32
    %c0_i32_1 = arith.constant 0 : i32
    return %c0_i32, %c0_i32_0 : i32, i32
  }
  func.func @transform_3(%arg0: i32) -> (i32, i32) {
    %c0_i32 = arith.constant 0 : i32
    %c0_i32_0 = arith.constant 0 : i32
    %c0_i32_1 = arith.constant 0 : i32
    return %c0_i32, %c0_i32_0 : i32, i32
  }
  func.func @transform_4(%arg0: i32) -> (i32, i32) {
    %c0_i32 = arith.constant 0 : i32
    %c0_i32_0 = arith.constant 0 : i32
    %c0_i32_1 = arith.constant 0 : i32
    return %c0_i32, %c0_i32_0 : i32, i32
  }
  func.func @transform_5(%arg0: i32) -> (i32, i32) {
    %c0_i32 = arith.constant 0 : i32
    %c0_i32_0 = arith.constant 0 : i32
    return %arg0, %c0_i32 : i32, i32
  }
}

</mosaic_0001>

<bundles_post_ra>
// kernel: tpu_custom_call.1
= control target key start
LH: loop header
LB: loop body
LE: loop exit
PB: predicated region body
PF: predicated region fallthrough
CT: control target
= control target key end

     0   :  { %10 = vsyncpa [#allocation3], 0  ;;  %s733_s0 = inlined_call_operand.hbm [shape: f32[16,128], index: 0, kind: input, shape index: {}]   ;;  %s734_s1 = inlined_call_operand.hbm [shape: f32[128,128], index: 1, kind: input, shape index: {}]   ;;  %s735_s2 = inlined_call_operand.vmem [shape: f32[1,128], index: 2, kind: input, shape index: {}]   ;;  %s736_s3 = inlined_call_operand.hbm [shape: f32[128,128], index: 3, kind: input, shape index: {}]   ;;  %s737_s4 = inlined_call_operand.vmem [shape: f32[1,128], index: 4, kind: input, shape index: {}]   ;;  %s738_s5 = inlined_call_operand.hbm [shape: f32[16,128], index: 5, kind: output, shape index: {}]  }
   0x1   :  { %11 = vsyncpa [#allocation6], 0 }
   0x2   :  { %12 = vsyncpa [#allocation4], 0  ;;  %s616_s18 = smov [#allocation5]   ;;  %s617_s20 = smov [#allocation2]  }
   0x3   :  { %s30_s19 = sshll.u32 %s616_s18, 4  ;;  %s18_s21 = sshll.u32 %s617_s20, 4  ;;  %s31_s19 = int_to_ptr.vmem [resolvable:$true] %s30_s19  ;;  %s652_s21 = int_to_ptr.vmem [resolvable:$true] %s18_s21 }
   0x4   :  { %s522_s24 = scalar_lea.hbm %s734_s1, 2048 }
   0x5   :  { %p523_p0 = scmp.ne.s32.totalorder %s734_s1, %s522_s24  ;;  %p526_p1 = scmp.lt.u32.totalorder %s522_s24, %s734_s1 }
   0x7   :  { %p528_p2 = pnand %p526_p1, %p523_p0 }
   0x9   :  { %531 = shalt.err (!%p528_p2)
}
   0xa   :  { %s532_s29 = scalar_lea.vmem %s31_s19, 2048  ;;  %p537_p4 = scmp.lt.s32.totalorder %s31_s19, %s31_s19 }
   0xb   :  { %p533_p3 = scmp.ne.s32.totalorder %s31_s19, %s532_s29  ;;  %p538_p5 = scmp.lt.s32.totalorder %s532_s29, %s532_s29 }
   0xd   :  { %p539_p6 = por %p538_p5, %p537_p4 }
   0xf   :  { %p540_p7 = pnand %p539_p6, %p533_p3 }
  0x11   :  { %543 = shalt.err (!%p540_p7)
}
  0x12   :  { %s618_s30 = smov 128   ;;  %s619_s6 = smov 8  }
  0x13   :  { %36 = dma.hbm_to_vmem [thread:$0]  %s734_s1, 2048, %s31_s19, [#allocation6], %s618_s30, %s618_s30, %s619_s6  }
  0x14   :  { %s544_s11 = scalar_lea.hbm %s733_s0, 256 }
  0x15   :  { %p545_p8 = scmp.ne.s32.totalorder %s733_s0, %s544_s11  ;;  %p548_p9 = scmp.lt.u32.totalorder %s544_s11, %s733_s0 }
  0x17   :  { %p550_p10 = pnand %p548_p9, %p545_p8 }
  0x19   :  { %553 = shalt.err (!%p550_p10)
}
  0x1a   :  { %s554_s16 = scalar_lea.vmem %s652_s21, 256  ;;  %p559_p12 = scmp.lt.s32.totalorder %s652_s21, %s652_s21 }
  0x1b   :  { %p555_p11 = scmp.ne.s32.totalorder %s652_s21, %s554_s16  ;;  %p560_p13 = scmp.lt.s32.totalorder %s554_s16, %s554_s16 }
  0x1d   :  { %p561_p0 = por %p560_p13, %p559_p12 }
  0x1f   :  { %p562_p1 = pnand %p561_p0, %p555_p11 }
  0x21   :  { %565 = shalt.err (!%p562_p1)
}
  0x22   :  { %24 = dma.hbm_to_vmem [thread:$0]  %s733_s0, 256, %s652_s21, [#allocation3], %s618_s30, %s618_s30, %s619_s6  }
  0x23   :  { %s620_s18 = smov [#allocation7]   ;;  %s566_s23 = scalar_lea.hbm %s736_s3, 2048 }
  0x24   :  { %s44_s19 = sshll.u32 %s620_s18, 4  ;;  %p567_p2 = scmp.ne.s32.totalorder %s736_s3, %s566_s23  ;;  %s45_s19 = int_to_ptr.vmem [resolvable:$true] %s44_s19 }
  0x25   :  { %p570_p3 = scmp.lt.u32.totalorder %s566_s23, %s736_s3 }
  0x27   :  { %p572_p4 = pnand %p570_p3, %p567_p2 }
  0x29   :  { %575 = shalt.err (!%p572_p4)
}
  0x2a   :  { %s576_s28 = scalar_lea.vmem %s45_s19, 2048  ;;  %p581_p6 = scmp.lt.s32.totalorder %s45_s19, %s45_s19 }
  0x2b   :  { %p577_p5 = scmp.ne.s32.totalorder %s45_s19, %s576_s28  ;;  %p582_p7 = scmp.lt.s32.totalorder %s576_s28, %s576_s28 }
  0x2d   :  { %p583_p8 = por %p582_p7, %p581_p6 }
  0x2f   :  { %p584_p9 = pnand %p583_p8, %p577_p5 }
  0x31   :  { %587 = shalt.err (!%p584_p9)
}
  0x32   :  { %50 = dma.hbm_to_vmem [thread:$0]  %s736_s3, 2048, %s45_s19, [#allocation6], %s618_s30, %s618_s30, %s619_s6  }
  0x33   :  { %610 = dma.done.wait [#allocation3], 256  }
  0x34   :  { %611 = vsyncadd [#allocation3], 4294967040 }
  0x35   :  { %612 = dma.done.wait [#allocation6], 4096  }
  0x36   :  { %613 = vsyncadd [#allocation6], 4294963200  ;;  %v64_v0 = vld [vmem:[#allocation5] sm:$0xff]  ;;  %v65_v1 = vld [vmem:[#allocation5 + $0x8] sm:$0xff]  ;;  %s621_s8 = smov [#allocation8]  }
  0x37   :  { %v66_v2 = vld [vmem:[#allocation5 + $0x10] sm:$0xff]  ;;  %v444_v3 = vpack.c.bf16 %v65_v1, %v64_v0  ;;  %v67_v4 = vld [vmem:[#allocation5 + $0x18] sm:$0xff]  ;;  %v68_v6 = vld [vmem:[#allocation5 + $0x20] sm:$0xff]  ;;  %s323_s9 = sshll.u32 %s621_s8, 4  ;;  %s324_s9 = int_to_ptr.vmem [resolvable:$true] %s323_s9 }
  0x38   :  { %v448_v5 = vpack.c.bf16 %v67_v4, %v66_v2  ;;  %v69_v7 = vld [vmem:[#allocation5 + $0x28] sm:$0xff]  ;;  %v704_v9 = vld [vmem:[#allocation2] sm:$0xff]  ;;  %v71_v11 = vld [vmem:[#allocation5 + $0x38] sm:$0xff]  ;;  %s588_s10 = scalar_lea.vmem %s324_s9, 256  ;;  %p593_p11 = scmp.lt.s32.totalorder %s324_s9, %s324_s9 }
  0x39   :  { %445 = vmatprep.subr.bf16.mxu0 %v444_v3  ;;  %v452_v8 = vpack.c.bf16 %v69_v7, %v68_v6  ;;  %v70_v10 = vld [vmem:[#allocation5 + $0x30] sm:$0xff]  ;;  %406 = vmatprep.mubr.f32.mxu0 %v704_v9  ;;  %v72_v13 = vld [vmem:[#allocation5 + $0x40] sm:$0xff]  ;;  %v73_v14 = vld [vmem:[#allocation5 + $0x48] sm:$0xff]  ;;  %p589_p10 = scmp.ne.s32.totalorder %s324_s9, %s588_s10  ;;  %p594_p12 = scmp.lt.s32.totalorder %s588_s10, %s588_s10 }
  0x3a   :  { %447 = vmatpush3.bf16.msra.mxu0 %v444_v3  ;;  %v456_v12 = vpack.c.bf16 %v71_v11, %v70_v10  ;;  %v460_v15 = vpack.c.bf16 %v73_v14, %v72_v13  ;;  %v74_v16 = vld [vmem:[#allocation5 + $0x50] sm:$0xff]  ;;  %v75_v17 = vld [vmem:[#allocation5 + $0x58] sm:$0xff]  ;;  %v76_v19 = vld [vmem:[#allocation5 + $0x60] sm:$0xff] }
  0x3b   :  { %449 = vmatprep.subr.bf16.mxu0 %v448_v5  ;;  %v464_v18 = vpack.c.bf16 %v75_v17, %v74_v16  ;;  %v77_v20 = vld [vmem:[#allocation5 + $0x68] sm:$0xff]  ;;  %v78_v22 = vld [vmem:[#allocation5 + $0x70] sm:$0xff]  ;;  %v79_v23 = vld [vmem:[#allocation5 + $0x78] sm:$0xff]  ;;  %p595_p13 = por %p594_p12, %p593_p11 }
  0x3c   :  { %v468_v21 = vpack.c.bf16 %v77_v20, %v76_v19  ;;  %v472_v24 = vpack.c.bf16 %v79_v23, %v78_v22  ;;  %v707_v25 = vld [vmem:[#allocation2 + $0x8] sm:$0xff]  ;;  %v216_v26 = vld [vmem:[#allocation7] sm:$0xff]  ;;  %v217_v27 = vld [vmem:[#allocation7 + $0x8] sm:$0xff] }
  0x3d   :  { %v218_v28 = vld [vmem:[#allocation7 + $0x10] sm:$0xff]  ;;  %v476_v29 = vpack.c.bf16 %v217_v27, %v216_v26  ;;  %v219_v30 = vld [vmem:[#allocation7 + $0x18] sm:$0xff]  ;;  %v220_v32 = vld [vmem:[#allocation7 + $0x20] sm:$0xff]  ;;  %p596_p0 = pnand %p595_p13, %p589_p10 }
  0x3e   :  { %451 = vmatpush3.bf16.msra.mxu0 %v448_v5  ;;  %v480_v31 = vpack.c.bf16 %v219_v30, %v218_v28  ;;  %v221_v33 = vld [vmem:[#allocation7 + $0x28] sm:$0xff]  ;;  %v222_v35 = vld [vmem:[#allocation7 + $0x30] sm:$0xff]  ;;  %v223_v36 = vld [vmem:[#allocation7 + $0x38] sm:$0xff] }
  0x3f   :  { %453 = vmatprep.subr.bf16.mxu0 %v452_v8  ;;  %477 = vmatprep.subr.bf16.mxu1 %v476_v29  ;;  %v484_v34 = vpack.c.bf16 %v221_v33, %v220_v32  ;;  %v488_v37 = vpack.c.bf16 %v223_v36, %v222_v35  ;;  %v224_v38 = vld [vmem:[#allocation7 + $0x40] sm:$0xff]  ;;  %v225_v39 = vld [vmem:[#allocation7 + $0x48] sm:$0xff]  ;;  %v226_v41 = vld [vmem:[#allocation7 + $0x50] sm:$0xff] }
  0x40   :  { %479 = vmatpush3.bf16.msra.mxu1 %v476_v29  ;;  %v492_v40 = vpack.c.bf16 %v225_v39, %v224_v38  ;;  %v227_v42 = vld [vmem:[#allocation7 + $0x58] sm:$0xff]  ;;  %v228_v44 = vld [vmem:[#allocation7 + $0x60] sm:$0xff]  ;;  %v229_v45 = vld [vmem:[#allocation7 + $0x68] sm:$0xff] }
  0x41   :  { %481 = vmatprep.subr.bf16.mxu1 %v480_v31  ;;  %v496_v43 = vpack.c.bf16 %v227_v42, %v226_v41  ;;  %v500_v46 = vpack.c.bf16 %v229_v45, %v228_v44  ;;  %v230_v47 = vld [vmem:[#allocation7 + $0x70] sm:$0xff]  ;;  %v231_v48 = vld [vmem:[#allocation7 + $0x78] sm:$0xff] }
  0x42   :  { %455 = vmatpush3.bf16.msra.mxu0 %v452_v8  ;;  %v504_v49 = vpack.c.bf16 %v231_v48, %v230_v47  ;;  %v336_v50 = vld [vmem:[%s735_s2] ss:$0 sm:$0xff] }
  0x43   :  { %457 = vmatprep.subr.bf16.mxu0 %v456_v12 }
  0x44   :  { %483 = vmatpush3.bf16.msra.mxu1 %v480_v31 }
  0x45   :  { %485 = vmatprep.subr.bf16.mxu1 %v484_v34 }
  0x46   :  { %459 = vmatpush3.bf16.msra.mxu0 %v456_v12 }
  0x47   :  { %461 = vmatprep.subr.bf16.mxu0 %v460_v15 }
  0x48   :  { %487 = vmatpush3.bf16.msra.mxu1 %v484_v34 }
  0x49   :  { %489 = vmatprep.subr.bf16.mxu1 %v488_v37 }
  0x4a   :  { %463 = vmatpush3.bf16.msra.mxu0 %v460_v15 }
  0x4b   :  { %465 = vmatprep.subr.bf16.mxu0 %v464_v18 }
  0x4c   :  { %491 = vmatpush3.bf16.msra.mxu1 %v488_v37 }
  0x4d   :  { %493 = vmatprep.subr.bf16.mxu1 %v492_v40 }
  0x4e   :  { %467 = vmatpush3.bf16.msra.mxu0 %v464_v18 }
  0x4f   :  { %469 = vmatprep.subr.bf16.mxu0 %v468_v21 }
  0x50   :  { %495 = vmatpush3.bf16.msra.mxu1 %v492_v40 }
  0x51   :  { %497 = vmatprep.subr.bf16.mxu1 %v496_v43 }
  0x52   :  { %471 = vmatpush3.bf16.msra.mxu0 %v468_v21 }
  0x53   :  { %473 = vmatprep.subr.bf16.mxu0 %v472_v24 }
  0x54   :  { %499 = vmatpush3.bf16.msra.mxu1 %v496_v43  ;;  %v337_v43 = vld [vmem:[%s737_s4] ss:$0 sm:$0xff] }
  0x55   :  { %501 = vmatprep.subr.bf16.mxu1 %v500_v46 }
  0x56   :  { %475 = vmatpush3.bf16.msra.mxu0 %v472_v24 }
  0x58   :  { %503 = vmatpush3.bf16.msra.mxu1 %v500_v46 }
  0x59   :  { %407 = vmatmul.mubr.f32.vlgmr.msra.gmra.mrb[0].mxu0 %v707_v25  ;;  %505 = vmatprep.subr.bf16.mxu1 %v504_v49 }
  0x5c   :  { %507 = vmatpush3.bf16.msra.mxu1 %v504_v49 }
 0x12c   :  { %v408_v51 = vpop.f32.mrb[0].mxu0 }
 0x12d   :  { %v159_v52 = vadd.f32 %v408_v51, %v336_v50  ;;  %v153_v53 = vpop.f32.mrb[1].mxu0 }
 0x12e   :  { %v154_v54 = vadd.f32 %v336_v50, %v153_v53 }
 0x12f   :  { %v165_v55 = vmul.f32 0.70710677, %v159_v52  ;;  %v163_v40 = vmul.f32 0.5, %v159_v52 }
 0x130   :  { %v164_v56 = vmul.f32 0.70710677, %v154_v54  ;;  %v162_v38 = vmul.f32 0.5, %v154_v54 }
 0x131   :  { %v167_v57 = vand.u32 2147483647, %v165_v55  ;;  %vm207_vm0 = vcmp.ge.f32.partialorder %v165_v55, 0.0 }
 0x132   :  { %v166_v58 = vand.u32 2147483647, %v164_v56  ;;  %vm206_vm1 = vcmp.ge.f32.partialorder %v164_v56, 0.0 }
 0x133   :  { %v169_v59 = vmul.f32 0.3275911, %v167_v57  ;;  %v195_v63 = vsub.f32 0.0, %v167_v57 }
 0x134   :  { %v168_v60 = vmul.f32 0.3275911, %v166_v58  ;;  %v194_v0 = vsub.f32 0.0, %v166_v58 }
 0x135   :  { %v171_v61 = vadd.f32 1.0, %v169_v59  ;;  %v197_v2 = vmul.f32 %v195_v63, %v167_v57 }
 0x136   :  { %v170_v62 = vadd.f32 1.0, %v168_v60  ;;  %v196_v4 = vmul.f32 %v194_v0, %v166_v58 }
 0x137   :  { %514 = vrcp.f32 %v171_v61  ;;  %v200_v8 = vmul.f32 1.442695, %v197_v2 }
 0x138   :  { %516 = vrcp.f32 %v170_v62  ;;  %v198_v11 = vmul.f32 1.442695, %v196_v4 }
 0x139   :  { %518 = vpow2.f32 %v200_v8 }
 0x13a   :  { %520 = vpow2.f32 %v198_v11 }
 0x141   :  { %v515_v1 = vpop.eup %514 }
 0x142   :  { %v517_v3 = vpop.eup %516  ;;  %v177_v5 = vmul.f32 1.0614054, %v515_v1 }
 0x143   :  { %v176_v6 = vmul.f32 1.0614054, %v517_v3  ;;  %v519_v26 = vpop.eup %518 }
 0x144   :  { %v179_v7 = vadd.f32 -1.4531521, %v177_v5  ;;  %v521_v28 = vpop.eup %520 }
 0x145   :  { %v178_v10 = vadd.f32 -1.4531521, %v176_v6 }
 0x146   :  { %v181_v12 = vmul.f32 %v515_v1, %v179_v7 }
 0x147   :  { %v180_v13 = vmul.f32 %v517_v3, %v178_v10 }
 0x148   :  { %v183_v14 = vadd.f32 1.4214138, %v181_v12 }
 0x149   :  { %v182_v15 = vadd.f32 1.4214138, %v180_v13 }
 0x14a   :  { %v185_v16 = vmul.f32 %v515_v1, %v183_v14 }
 0x14b   :  { %v184_v17 = vmul.f32 %v517_v3, %v182_v15 }
 0x14c   :  { %v187_v18 = vadd.f32 -0.28449672, %v185_v16 }
 0x14d   :  { %v186_v19 = vadd.f32 -0.28449672, %v184_v17 }
 0x14e   :  { %v189_v20 = vmul.f32 %v515_v1, %v187_v18 }
 0x14f   :  { %v188_v21 = vmul.f32 %v517_v3, %v186_v19 }
 0x150   :  { %v191_v22 = vadd.f32 0.2548296, %v189_v20 }
 0x151   :  { %v190_v23 = vadd.f32 0.2548296, %v188_v21 }
 0x152   :  { %v193_v24 = vmul.f32 %v515_v1, %v191_v22 }
 0x153   :  { %v192_v27 = vmul.f32 %v517_v3, %v190_v23 }
 0x154   :  { %v203_v29 = vmul.f32 %v519_v26, %v193_v24 }
 0x155   :  { %v202_v30 = vmul.f32 %v521_v28, %v192_v27 }
 0x156   :  { %v205_v31 = vsub.f32 1.0, %v203_v29 }
 0x157   :  { %v204_v32 = vsub.f32 1.0, %v202_v30 }
 0x158   :  { %v209_v33 = vsub.f32 0.0, %v205_v31 }
 0x159   :  { %v208_v34 = vsub.f32 0.0, %v204_v32 }
 0x15a   :  { %v211_v35 = vsel %vm207_vm0, %v205_v31, %v209_v33 }
 0x15b   :  { %v210_v36 = vsel %vm206_vm1, %v204_v32, %v208_v34  ;;  %v213_v37 = vadd.f32 1.0, %v211_v35 }
 0x15c   :  { %v212_v39 = vadd.f32 1.0, %v210_v36 }
 0x15d   :  { %v215_v42 = vmul.f32 %v213_v37, %v163_v40 }
 0x15e   :  { %v214_v41 = vmul.f32 %v212_v39, %v162_v38 }
 0x160   :  { %441 = vmatprep.mubr.f32.mxu1 %v214_v41 }
 0x161   :  { %442 = vmatmul.mubr.f32.vlgmr.msra.gmra.mrb[0].mxu1 %v215_v42 }
 0x234   :  { %v443_v44 = vpop.f32.mrb[0].mxu1 }
 0x235   :  { %v311_v45 = vadd.f32 %v443_v44, %v337_v43  ;;  %v305_v46 = vpop.f32.mrb[1].mxu1 }
 0x236   :  { %v306_v47 = vadd.f32 %v337_v43, %v305_v46 }
 0x237   :  { %v315_v48 = vadd.f32 %v311_v45, %v707_v25 }
 0x238   :  { %v314_v49 = vadd.f32 %v306_v47, %v704_v9 }
 0x239   :  { %317 = vst [vmem:[#allocation8 + $0x8] sm:$0xff] %v315_v48 }
 0x23a   :  { %316 = vst [vmem:[#allocation8] sm:$0xff] %v314_v49 }
 0x23b   :  { %599 = shalt.err (!%p596_p0)
}
 0x23c   :  { %s600_s12 = scalar_lea.hbm %s738_s5, 256 }
 0x23d   :  { %p601_p1 = scmp.ne.s32.totalorder %s738_s5, %s600_s12  ;;  %p604_p2 = scmp.lt.u32.totalorder %s600_s12, %s738_s5 }
 0x23f   :  { %p606_p3 = pnand %p604_p2, %p601_p1 }
 0x241   :  { %609 = shalt.err (!%p606_p3)
}
 0x242   :  { %329 = dma.vmem_to_hbm [thread:$0]  %s324_s9, 256, %s738_s5, [#allocation4], %s618_s30, %s618_s30, %s619_s6  }
 0x243   :  { %614 = dma.done.wait [#allocation4], 256  }
 0x244   :  { %615 = vsyncadd [#allocation4], 4294967040 }
 0x245   :  { %333 = vsyncpa [#allocation3], 1 }
 0x246   :  { %334 = vsyncpa [#allocation6], 1 }
 0x247   :  { %335 = vsyncpa [#allocation4], 1 }

</bundles_post_ra>
